<compile_context>
chip_gen: v7x
topology: tpu7x:2x2x1
jax: 0.10.0
libtpu: 0.0.40
codegen_flags: <defaults>
</compile_context>

<pallas_src>
import functools

import jax
import jax.numpy as jnp
from jax.experimental import pallas as pl
from jax.experimental.pallas import tpu as pltpu


def _posecnn_kernel(x_ref, w_in_ref, s0_ref, b0_ref,
                    w_res_ref, s_res_ref, b_res_ref,
                    w_out_ref, o_ref, *, num_res_layers):
    # x_ref:     [Bb, Nj, Nd]   NCW input tile (Bb batch elements per grid step)
    # w_in_ref:  [Nj, H]
    # s0/b0:     [1, H]         folded BN affine of the input layer
    # w_res_ref: [L, 3H, H]     per-layer packed tap weights ([W0.T; W1.T; W2.T])
    # s_res/b_res: [L, H]       folded BN affine of each residual layer
    # w_out_ref: [H, Cout]
    # o_ref:     [Bb, Cout, Nd] NCW output tile
    bb, nj, nd = x_ref.shape

    # NCW -> channels-last slab [M, Nj] with M = Bb*Nd (one big MXU M dim).
    x = jnp.transpose(x_ref[...], (0, 2, 1)).reshape(bb * nd, nj)

    # input layer: 1x1 conv == matmul, then folded BN + ReLU
    h = jnp.dot(x, w_in_ref[...], preferred_element_type=jnp.float32)   # [M, H]
    h = jnp.maximum(h * s0_ref[...] + b0_ref[...], 0.0)

    m = bb * nd
    hsz = h.shape[1]

    # Boundary masks, hoisted out of the layer loop.  Because the Bb batch
    # elements are packed into one slab, the spatial rolls wrap across batch
    # seams; masking rows where (row within its batch element) == 0 / Nd-1
    # restores zero padding AND prevents cross-batch leakage.
    row_in_b = jax.lax.broadcasted_iota(jnp.int32, (bb, nd, hsz), 1).reshape(m, hsz)
    is_first = row_in_b == 0
    is_last = row_in_b == nd - 1

    for l in range(num_res_layers):
        # zero-padded spatial shifts (sublane roll + per-batch-row mask)
        h_prev = jnp.where(is_first, 0.0, pltpu.roll(h, shift=1, axis=0))      # h[d-1]
        h_next = jnp.where(is_last, 0.0, pltpu.roll(h, shift=m - 1, axis=0))   # h[d+1]

        # fused k=3 conv: single (M, 3H) @ (3H, H) matmul
        taps = jnp.concatenate([h_prev, h, h_next], axis=1)                    # [M, 3H]
        y = jnp.dot(taps, w_res_ref[l], preferred_element_type=jnp.float32)    # [M, H]
        y = jnp.maximum(y * s_res_ref[l] + b_res_ref[l], 0.0)

        h = h + y                                                              # residual

    # output layer: 1x1 conv == matmul (no bias), then back to NCW in-kernel.
    out = jnp.dot(h, w_out_ref[...], preferred_element_type=jnp.float32)       # [M, Cout]
    cout = out.shape[1]
    o_ref[...] = jnp.transpose(out.reshape(bb, nd, cout), (0, 2, 1))


def posecnn_forward(x_ncw, params, *, block_b=None):
    """x_ncw: [B, Nj, Nd] float32  ->  [B, Cout, Nd] float32 (PyTorch layout).

    No host-side transposes: the kernel consumes and produces NCW directly.
    """
    (w_in_t, s0, b0, w_res, s_res, b_res, w_out_t) = params
    B, Nj, Nd = x_ncw.shape
    H = w_in_t.shape[1]
    Cout = w_out_t.shape[1]
    L = w_res.shape[0]

    if block_b is None:
        # Keep >=2 grid steps when possible so both v7x TensorCores get work,
        # while packing as many batch elements per step as that allows.
        block_b = B // 2 if (B >= 2 and B % 2 == 0) else B
    assert B % block_b == 0, (B, block_b)
    num_blocks = B // block_b

    kernel = functools.partial(_posecnn_kernel, num_res_layers=L)

    out = pl.pallas_call(
        kernel,
        out_shape=jax.ShapeDtypeStruct((B, Cout, Nd), jnp.float32),
        grid_spec=pltpu.PrefetchScalarGridSpec(
            num_scalar_prefetch=0,
            grid=(num_blocks,),
            in_specs=[
                pl.BlockSpec((block_b, Nj, Nd), lambda b: (b, 0, 0)),    # x (NCW)
                pl.BlockSpec((Nj, H), lambda b: (0, 0)),                 # w_in_t
                pl.BlockSpec((1, H), lambda b: (0, 0)),                  # s0
                pl.BlockSpec((1, H), lambda b: (0, 0)),                  # b0
                pl.BlockSpec((L, 3 * H, H), lambda b: (0, 0, 0)),        # w_res (packed)
                pl.BlockSpec((L, H), lambda b: (0, 0)),                  # s_res
                pl.BlockSpec((L, H), lambda b: (0, 0)),                  # b_res
                pl.BlockSpec((H, Cout), lambda b: (0, 0)),               # w_out_t
            ],
            out_specs=pl.BlockSpec((block_b, Cout, Nd), lambda b: (b, 0, 0)),
        ),
        compiler_params=pltpu.CompilerParams(
            dimension_semantics=("parallel",)),
    )(x_ncw.astype(jnp.float32), w_in_t, s0, b0, w_res, s_res, b_res, w_out_t)

    return out


def make_params(key, num_joints, hidden_size, output_size, num_res_layers=2,
                eps=1e-5):
    """Deterministic synthetic parameters (PyTorch shapes), returned pre-folded."""
    ks = jax.random.split(key, 4 + 5 * (num_res_layers + 1))
    ki = iter(range(len(ks)))

    def nrm(shape, scale=0.1):
        return scale * jax.random.normal(ks[next(ki)], shape, jnp.float32)

    def bn(ch):
        gamma = jax.random.uniform(ks[next(ki)], (ch,), jnp.float32, 0.5, 1.5)
        beta = nrm((ch,))
        mean = nrm((ch,))
        var = jax.random.uniform(ks[next(ki)], (ch,), jnp.float32, 0.5, 1.5)
        scale = gamma / jnp.sqrt(var + eps)
        bias = beta - mean * scale
        return scale, bias

    # PyTorch weights: Conv1d(in, out, k) weight has shape [out, in, k]
    W_in = nrm((hidden_size, num_joints, 1))
    s0_v, b0_v = bn(hidden_size)

    W_res_list, s_res_list, b_res_list = [], [], []
    for _ in range(num_res_layers):
        W_res_list.append(nrm((hidden_size, hidden_size, 3)))
        s, b = bn(hidden_size)
        s_res_list.append(s)
        b_res_list.append(b)

    W_out = nrm((output_size, hidden_size, 1))

    # fold into kernel-friendly layouts
    w_in_t = jnp.transpose(W_in[:, :, 0], (1, 0))                    # [Nj, H]
    s0 = s0_v.reshape(1, hidden_size)
    b0 = b0_v.reshape(1, hidden_size)
    # packed k=3 weights: rows [W[:,:,0].T ; W[:,:,1].T ; W[:,:,2].T] -> (3H, H)
    w_res = jnp.stack(
        [jnp.concatenate([jnp.transpose(W[:, :, t], (1, 0)) for t in range(3)],
                         axis=0)
         for W in W_res_list], axis=0)                               # [L, 3H, H]
    s_res = jnp.stack(s_res_list, axis=0)                            # [L, H]
    b_res = jnp.stack(b_res_list, axis=0)                            # [L, H]
    w_out_t = jnp.transpose(W_out[:, :, 0], (1, 0))                  # [H, Cout]

    folded = (w_in_t, s0, b0, w_res, s_res, b_res, w_out_t)
    raw = (W_in, (s0_v, b0_v), W_res_list, list(zip(s_res_list, b_res_list)), W_out)
    return folded, raw


def ref_forward(x_ncw, raw):
    """Pure-JAX reference in PyTorch NCW layout (folded-BN eval semantics)."""
    W_in, (s0, b0), W_res_list, bn_res, W_out = raw
    B, Nj, Nd = x_ncw.shape
    h = jnp.einsum('oc,bcd->bod', W_in[:, :, 0], x_ncw)
    h = jax.nn.relu(h * s0[None, :, None] + b0[None, :, None])
    for W, (s, b) in zip(W_res_list, bn_res):
        hp = jnp.pad(h, ((0, 0), (0, 0), (1, 1)))
        y = sum(jnp.einsum('oc,bcd->bod', W[:, :, t], hp[:, :, t:t + Nd])
                for t in range(3))
        y = jax.nn.relu(y * s[None, :, None] + b[None, :, None])
        h = h + y
    return jnp.einsum('oc,bcd->bod', W_out[:, :, 0], h)


if __name__ == "__main__":
    B, Nj, Nd = 4, 4, 16          # batch, num_joints, seq length
    H, Cout = 32, 8               # hidden_size, output_size

    key = jax.random.PRNGKey(0)
    kx, kp = jax.random.split(key)
    x = jax.random.normal(kx, (B, Nj, Nd), jnp.float32)   # PyTorch layout [B, Nj, Nd]

    folded, raw = make_params(kp, Nj, H, Cout)

    out = posecnn_forward(x, folded)    # grid=(2,), 2 batch elements per step
    out = jax.block_until_ready(out)

    expected = ref_forward(x, raw)
    assert out.shape == (B, Cout, Nd), out.shape
    assert jnp.allclose(out, expected, rtol=1e-4, atol=1e-5), \
        float(jnp.max(jnp.abs(out - expected)))

    print("KERNEL_OK")
</pallas_src>

<mosaic_0001>
module attributes {stable_mosaic.version = 11 : i64} {
  func.func @_posecnn_kernel(%arg0: i32, %arg1: memref<2x4x16xf32, #tpu.memory_space<vmem>>, %arg2: memref<4x32xf32, #tpu.memory_space<vmem>>, %arg3: memref<1x32xf32, #tpu.memory_space<vmem>>, %arg4: memref<1x32xf32, #tpu.memory_space<vmem>>, %arg5: memref<2x96x32xf32, #tpu.memory_space<vmem>>, %arg6: memref<2x32xf32, #tpu.memory_space<vmem>>, %arg7: memref<2x32xf32, #tpu.memory_space<vmem>>, %arg8: memref<32x8xf32, #tpu.memory_space<vmem>>, %arg9: memref<2x8x16xf32, #tpu.memory_space<vmem>>) attributes {dimension_semantics = [#tpu.dimension_semantics<parallel>], iteration_bounds = array<i64: 2>, scalar_prefetch = 0 : i64, scratch_operands = 0 : i64, tpu.core_type = #tpu.core_type<tc>, window_params = [{transform_indices = @transform_0, window_bounds = array<i64: 2, 4, 16>}, {pipeline_mode = #tpu.pipeline_mode<synchronous>, transform_indices = @transform_1, window_bounds = array<i64: 4, 32>}, {pipeline_mode = #tpu.pipeline_mode<synchronous>, transform_indices = @transform_2, window_bounds = array<i64: 1, 32>}, {pipeline_mode = #tpu.pipeline_mode<synchronous>, transform_indices = @transform_3, window_bounds = array<i64: 1, 32>}, {pipeline_mode = #tpu.pipeline_mode<synchronous>, transform_indices = @transform_4, window_bounds = array<i64: 2, 96, 32>}, {pipeline_mode = #tpu.pipeline_mode<synchronous>, transform_indices = @transform_5, window_bounds = array<i64: 2, 32>}, {pipeline_mode = #tpu.pipeline_mode<synchronous>, transform_indices = @transform_6, window_bounds = array<i64: 2, 32>}, {pipeline_mode = #tpu.pipeline_mode<synchronous>, transform_indices = @transform_7, window_bounds = array<i64: 32, 8>}, {transform_indices = @transform_8, window_bounds = array<i64: 2, 8, 16>}]} {
    %c0 = arith.constant 0 : index
    %c0_0 = arith.constant 0 : index
    %c0_1 = arith.constant 0 : index
    %0 = vector.load %arg1[%c0, %c0_0, %c0_1] : memref<2x4x16xf32, #tpu.memory_space<vmem>>, vector<2x4x16xf32>
    %1 = tpu.transpose %0, [0, 2, 1] : vector<2x4x16xf32> -> vector<2x16x4xf32>
    %2 = vector.shape_cast %1 : vector<2x16x4xf32> to vector<32x4xf32>
    %c0_2 = arith.constant 0 : index
    %c0_3 = arith.constant 0 : index
    %3 = vector.load %arg2[%c0_2, %c0_3] : memref<4x32xf32, #tpu.memory_space<vmem>>, vector<4x32xf32>
    %cst = arith.constant dense<0.000000e+00> : vector<32x32xf32>
    %4 = tpu.matmul %2, %3, %cst {dimension_numbers = #tpu.dot_dimension_numbers<[1], [0], [0], [1], [0, 0, 1, 1], [], []>} : vector<32x4xf32>, vector<4x32xf32>, vector<32x32xf32> -> vector<32x32xf32>
    %c0_4 = arith.constant 0 : index
    %c0_5 = arith.constant 0 : index
    %5 = vector.load %arg3[%c0_4, %c0_5] : memref<1x32xf32, #tpu.memory_space<vmem>>, vector<1x32xf32>
    %6 = vector.broadcast %5 : vector<1x32xf32> to vector<32x32xf32>
    %7 = arith.mulf %4, %6 : vector<32x32xf32>
    %c0_6 = arith.constant 0 : index
    %c0_7 = arith.constant 0 : index
    %8 = vector.load %arg4[%c0_6, %c0_7] : memref<1x32xf32, #tpu.memory_space<vmem>>, vector<1x32xf32>
    %9 = vector.broadcast %8 : vector<1x32xf32> to vector<32x32xf32>
    %10 = arith.addf %7, %9 : vector<32x32xf32>
    %cst_8 = arith.constant 0.000000e+00 : f32
    %11 = vector.broadcast %cst_8 : f32 to vector<32x32xf32>
    %12 = arith.maximumf %10, %11 : vector<32x32xf32>
    %13 = tpu.iota {dimensions = array<i32: 1>} : vector<2x16x32xi32>
    %14 = vector.shape_cast %13 : vector<2x16x32xi32> to vector<32x32xi32>
    %c0_i32 = arith.constant 0 : i32
    %15 = vector.broadcast %c0_i32 : i32 to vector<32x32xi32>
    %16 = arith.cmpi eq, %14, %15 : vector<32x32xi32>
    %c15_i32 = arith.constant 15 : i32
    %17 = vector.broadcast %c15_i32 : i32 to vector<32x32xi32>
    %18 = arith.cmpi eq, %14, %17 : vector<32x32xi32>
    %c1_i32 = arith.constant 1 : i32
    %19 = tpu.dynamic_rotate %12 by %c1_i32 dim 0 : vector<32x32xf32>, i32 -> vector<32x32xf32>
    %cst_9 = arith.constant 0.000000e+00 : f32
    %20 = vector.broadcast %cst_9 : f32 to vector<32x32xf32>
    %21 = arith.select %16, %20, %19 : vector<32x32xi1>, vector<32x32xf32>
    %c31_i32 = arith.constant 31 : i32
    %22 = tpu.dynamic_rotate %12 by %c31_i32 dim 0 : vector<32x32xf32>, i32 -> vector<32x32xf32>
    %cst_10 = arith.constant 0.000000e+00 : f32
    %23 = vector.broadcast %cst_10 : f32 to vector<32x32xf32>
    %24 = arith.select %18, %23, %22 : vector<32x32xi1>, vector<32x32xf32>
    %25 = tpu.concatenate %21, %12, %24 in 1 : vector<32x32xf32>, vector<32x32xf32>, vector<32x32xf32> -> vector<32x96xf32>
    %c0_11 = arith.constant 0 : index
    %c0_12 = arith.constant 0 : index
    %c0_13 = arith.constant 0 : index
    %26 = vector.load %arg5[%c0_11, %c0_12, %c0_13] : memref<2x96x32xf32, #tpu.memory_space<vmem>>, vector<1x96x32xf32>
    %27 = vector.shape_cast %26 : vector<1x96x32xf32> to vector<96x32xf32>
    %cst_14 = arith.constant dense<0.000000e+00> : vector<32x32xf32>
    %28 = tpu.matmul %25, %27, %cst_14 {dimension_numbers = #tpu.dot_dimension_numbers<[1], [0], [0], [1], [0, 0, 1, 1], [], []>} : vector<32x96xf32>, vector<96x32xf32>, vector<32x32xf32> -> vector<32x32xf32>
    %c0_15 = arith.constant 0 : index
    %c0_16 = arith.constant 0 : index
    %29 = vector.load %arg6[%c0_15, %c0_16] : memref<2x32xf32, #tpu.memory_space<vmem>>, vector<1x32xf32>
    %30 = vector.shape_cast %29 : vector<1x32xf32> to vector<32xf32>
    %31 = vector.shape_cast %30 : vector<32xf32> to vector<1x32xf32>
    %32 = vector.broadcast %31 : vector<1x32xf32> to vector<32x32xf32>
    %33 = arith.mulf %28, %32 : vector<32x32xf32>
    %c0_17 = arith.constant 0 : index
    %c0_18 = arith.constant 0 : index
    %34 = vector.load %arg7[%c0_17, %c0_18] : memref<2x32xf32, #tpu.memory_space<vmem>>, vector<1x32xf32>
    %35 = vector.shape_cast %34 : vector<1x32xf32> to vector<32xf32>
    %36 = vector.shape_cast %35 : vector<32xf32> to vector<1x32xf32>
    %37 = vector.broadcast %36 : vector<1x32xf32> to vector<32x32xf32>
    %38 = arith.addf %33, %37 : vector<32x32xf32>
    %cst_19 = arith.constant 0.000000e+00 : f32
    %39 = vector.broadcast %cst_19 : f32 to vector<32x32xf32>
    %40 = arith.maximumf %38, %39 : vector<32x32xf32>
    %41 = arith.addf %12, %40 : vector<32x32xf32>
    %c1_i32_20 = arith.constant 1 : i32
    %42 = tpu.dynamic_rotate %41 by %c1_i32_20 dim 0 : vector<32x32xf32>, i32 -> vector<32x32xf32>
    %cst_21 = arith.constant 0.000000e+00 : f32
    %43 = vector.broadcast %cst_21 : f32 to vector<32x32xf32>
    %44 = arith.select %16, %43, %42 : vector<32x32xi1>, vector<32x32xf32>
    %c31_i32_22 = arith.constant 31 : i32
    %45 = tpu.dynamic_rotate %41 by %c31_i32_22 dim 0 : vector<32x32xf32>, i32 -> vector<32x32xf32>
    %cst_23 = arith.constant 0.000000e+00 : f32
    %46 = vector.broadcast %cst_23 : f32 to vector<32x32xf32>
    %47 = arith.select %18, %46, %45 : vector<32x32xi1>, vector<32x32xf32>
    %48 = tpu.concatenate %44, %41, %47 in 1 : vector<32x32xf32>, vector<32x32xf32>, vector<32x32xf32> -> vector<32x96xf32>
    %c1 = arith.constant 1 : index
    %c0_24 = arith.constant 0 : index
    %c0_25 = arith.constant 0 : index
    %49 = vector.load %arg5[%c1, %c0_24, %c0_25] : memref<2x96x32xf32, #tpu.memory_space<vmem>>, vector<1x96x32xf32>
    %50 = vector.shape_cast %49 : vector<1x96x32xf32> to vector<96x32xf32>
    %cst_26 = arith.constant dense<0.000000e+00> : vector<32x32xf32>
    %51 = tpu.matmul %48, %50, %cst_26 {dimension_numbers = #tpu.dot_dimension_numbers<[1], [0], [0], [1], [0, 0, 1, 1], [], []>} : vector<32x96xf32>, vector<96x32xf32>, vector<32x32xf32> -> vector<32x32xf32>
    %c1_27 = arith.constant 1 : index
    %c0_28 = arith.constant 0 : index
    %52 = vector.load %arg6[%c1_27, %c0_28] : memref<2x32xf32, #tpu.memory_space<vmem>>, vector<1x32xf32>
    %53 = vector.shape_cast %52 : vector<1x32xf32> to vector<32xf32>
    %54 = vector.shape_cast %53 : vector<32xf32> to vector<1x32xf32>
    %55 = vector.broadcast %54 : vector<1x32xf32> to vector<32x32xf32>
    %56 = arith.mulf %51, %55 : vector<32x32xf32>
    %c1_29 = arith.constant 1 : index
    %c0_30 = arith.constant 0 : index
    %57 = vector.load %arg7[%c1_29, %c0_30] : memref<2x32xf32, #tpu.memory_space<vmem>>, vector<1x32xf32>
    %58 = vector.shape_cast %57 : vector<1x32xf32> to vector<32xf32>
    %59 = vector.shape_cast %58 : vector<32xf32> to vector<1x32xf32>
    %60 = vector.broadcast %59 : vector<1x32xf32> to vector<32x32xf32>
    %61 = arith.addf %56, %60 : vector<32x32xf32>
    %cst_31 = arith.constant 0.000000e+00 : f32
    %62 = vector.broadcast %cst_31 : f32 to vector<32x32xf32>
    %63 = arith.maximumf %61, %62 : vector<32x32xf32>
    %64 = arith.addf %41, %63 : vector<32x32xf32>
    %c0_32 = arith.constant 0 : index
    %c0_33 = arith.constant 0 : index
    %65 = vector.load %arg8[%c0_32, %c0_33] : memref<32x8xf32, #tpu.memory_space<vmem>>, vector<32x8xf32>
    %cst_34 = arith.constant dense<0.000000e+00> : vector<32x8xf32>
    %66 = tpu.matmul %64, %65, %cst_34 {dimension_numbers = #tpu.dot_dimension_numbers<[1], [0], [0], [1], [0, 0, 1, 1], [], []>} : vector<32x32xf32>, vector<32x8xf32>, vector<32x8xf32> -> vector<32x8xf32>
    %67 = vector.shape_cast %66 : vector<32x8xf32> to vector<2x16x8xf32>
    %68 = tpu.transpose %67, [0, 2, 1] : vector<2x16x8xf32> -> vector<2x8x16xf32>
    %c0_35 = arith.constant 0 : index
    %c0_36 = arith.constant 0 : index
    %c0_37 = arith.constant 0 : index
    %69 = vector.load %arg9[%c0_35, %c0_36, %c0_37] : memref<2x8x16xf32, #tpu.memory_space<vmem>>, vector<2x8x16xf32>
    tpu.vector_store %arg9[%c0_35, %c0_36, %c0_37], %68 {strides = array<i32>} : memref<2x8x16xf32, #tpu.memory_space<vmem>>, vector<2x8x16xf32>,
    return
  }
  func.func @transform_0(%arg0: i32) -> (i32, i32, i32) {
    %c0_i32 = arith.constant 0 : i32
    %c0_i32_0 = arith.constant 0 : i32
    %c0_i32_1 = arith.constant 0 : i32
    return %arg0, %c0_i32, %c0_i32_0 : i32, i32, i32
  }
  func.func @transform_1(%arg0: i32) -> (i32, i32) {
    %c0_i32 = arith.constant 0 : i32
    %c0_i32_0 = arith.constant 0 : i32
    %c0_i32_1 = arith.constant 0 : i32
    return %c0_i32, %c0_i32_0 : i32, i32
  }
  func.func @transform_2(%arg0: i32) -> (i32, i32) {
    %c0_i32 = arith.constant 0 : i32
    %c0_i32_0 = arith.constant 0 : i32
    %c0_i32_1 = arith.constant 0 : i32
    return %c0_i32, %c0_i32_0 : i32, i32
  }
  func.func @transform_3(%arg0: i32) -> (i32, i32) {
    %c0_i32 = arith.constant 0 : i32
    %c0_i32_0 = arith.constant 0 : i32
    %c0_i32_1 = arith.constant 0 : i32
    return %c0_i32, %c0_i32_0 : i32, i32
  }
  func.func @transform_4(%arg0: i32) -> (i32, i32, i32) {
    %c0_i32 = arith.constant 0 : i32
    %c0_i32_0 = arith.constant 0 : i32
    %c0_i32_1 = arith.constant 0 : i32
    %c0_i32_2 = arith.constant 0 : i32
    return %c0_i32, %c0_i32_0, %c0_i32_1 : i32, i32, i32
  }
  func.func @transform_5(%arg0: i32) -> (i32, i32) {
    %c0_i32 = arith.constant 0 : i32
    %c0_i32_0 = arith.constant 0 : i32
    %c0_i32_1 = arith.constant 0 : i32
    return %c0_i32, %c0_i32_0 : i32, i32
  }
  func.func @transform_6(%arg0: i32) -> (i32, i32) {
    %c0_i32 = arith.constant 0 : i32
    %c0_i32_0 = arith.constant 0 : i32
    %c0_i32_1 = arith.constant 0 : i32
    return %c0_i32, %c0_i32_0 : i32, i32
  }
  func.func @transform_7(%arg0: i32) -> (i32, i32) {
    %c0_i32 = arith.constant 0 : i32
    %c0_i32_0 = arith.constant 0 : i32
    %c0_i32_1 = arith.constant 0 : i32
    return %c0_i32, %c0_i32_0 : i32, i32
  }
  func.func @transform_8(%arg0: i32) -> (i32, i32, i32) {
    %c0_i32 = arith.constant 0 : i32
    %c0_i32_0 = arith.constant 0 : i32
    %c0_i32_1 = arith.constant 0 : i32
    return %arg0, %c0_i32, %c0_i32_0 : i32, i32, i32
  }
}

</mosaic_0001>

<bundles_post_ra>
// kernel: tpu_custom_call.1
= control target key start
LH: loop header
LB: loop body
LE: loop exit
PB: predicated region body
PF: predicated region fallthrough
CT: control target
= control target key end

     0   :  { %13 = vsyncpa [#allocation3], 0  ;;  %s1906_s0 = inlined_call_operand.vmem [shape: f32[4,4,16], index: 0, kind: input, shape index: {}]   ;;  %s1907_s1 = inlined_call_operand.vmem [shape: f32[4,32], index: 1, kind: input, shape index: {}]   ;;  %s1908_s2 = inlined_call_operand.vmem [shape: f32[1,32], index: 2, kind: input, shape index: {}]   ;;  %s1909_s3 = inlined_call_operand.vmem [shape: f32[1,32], index: 3, kind: input, shape index: {}]   ;;  %s1910_s4 = inlined_call_operand.vmem [shape: f32[2,96,32], index: 4, kind: input, shape index: {}]   ;;  %s1911_s5 = inlined_call_operand.vmem [shape: f32[2,32], index: 5, kind: input, shape index: {}]   ;;  %s1912_s6 = inlined_call_operand.vmem [shape: f32[2,32], index: 6, kind: input, shape index: {}]   ;;  %s1913_s7 = inlined_call_operand.vmem [shape: f32[32,8], index: 7, kind: input, shape index: {}]   ;;  %s1914_s8 = inlined_call_operand.hbm [shape: f32[4,8,16], index: 8, kind: output, shape index: {}]  }
   0x1   :  { %15 = vsyncpa [#allocation3 + $0x1], 0  ;;  %s1550_s27 = smov 0   ;;  %s1552_s28 = smov 0  }
   0x2   :  { %s1554_s29 = smov 0   ;;  %s1556_s30 = smov 0  }
   0x3 LB: > { %s1571_s9 = sadd.s32 4294967295, %s1498_s30   ;;  %s1157_s10 = sadd.s32 4294967294, %s1498_s30   ;;  %s1498_s30 = sphi %s1556_s30, %s1920_s30   ;;  %s1494_s29 = sphi %s1554_s29, %s1919_s29   ;;  %s1490_s28 = sphi %s1552_s28, %s1918_s28   ;;  %s1486_s27 = sphi %s1550_s27, %s1917_s27  }
   0x4   : > { %s1575_s11 = sadd.s32 1, %s1498_s30   ;;  %s201_s12 = sadd.s32 1, %s1494_s29 }
   0x5   : > { %s198_s13 = ssub.s32 %s1498_s30, %s1575_s11  ;;  %p211_p0 = scmp.ne.s32.totalorder %s1494_s29, %s1490_s28 }
   0x6   : > { %p199_p1 = scmp.eq.s32.totalorder %s198_s13, 0  ;;  %p212_p2 = scmp.eq.s32.totalorder %s1571_s9, 1 }
   0x7   : > { %p217_p3 = scmp.ne.s32.totalorder %s1490_s28, %s1486_s27  ;;  %p218_p4 = scmp.eq.s32.totalorder %s1157_s10, 1 }
   0x8   : > { %s1586_s14 = scalar_select %p199_p1, %s1494_s29, %s201_s12  }
   0x9   : > { %p1588_p5 = por %p212_p2, %p211_p0  ;;  %p1592_p6 = por %p218_p4, %p217_p3 }
   0xa   : > { %p1160_p7 = scmp.ge.s32.totalorder %s1498_s30, 1  ;;  %p266_p8 = scmp.lt.s32.totalorder %s1498_s30, 3 }
   0xc   : > { %p267_p9 = pnand %p1160_p7, %p266_p8 }
   0xd   : > { %s1162_s17 = sshll.u32 (!%p267_p9), %s1571_s9, 1  ;;  %v373_v1 = vld [vmem:[%s1907_s1] sm:$0xf] (!%p267_p9)  ;;  %vm387_vm0 = vcmask (!%p267_p9), 1043456   ;;  %vm374_vm1 = vcmask (!%p267_p9), 31744   ;;  %v578_v8 = vld [vmem:[%s1910_s4 + $0x8] sm:$0xff] (!%p267_p9)  ;;  %v502_v32 = vlaneseq (!%p267_p9) }
   0xe   : > { %270 = sbr.rel (%p267_p9) target bundleno = 1445 (0x5a5), region = 52  ;;  %p301_p10 = scmp.lt.s32.totalorder (!%p267_p9), %s1162_s17, 3  ;;  %1250 = vmatprep.subr.msk.mxu0 (!%p267_p9), %vm387_vm0, %v373_v1  ;;  %v577_v7 = vld [vmem:[%s1910_s4] sm:$0xff] (!%p267_p9)  ;;  %v579_v9 = vld [vmem:[%s1910_s4 + $0x10] sm:$0xff] (!%p267_p9)  ;;  %v580_v11 = vld [vmem:[%s1910_s4 + $0x18] sm:$0xff] (!%p267_p9)  ;;  %vm572_vm6 = vcmask (!%p267_p9), 523264  }
   0xf   : > { %1251 = vmatpush3.msk.msra.mxu0 (!%p267_p9), %vm387_vm0, %v373_v1  ;;  %v1332_v10 = vpack.c.bf16 (!%p267_p9), %v578_v8, %v577_v7  ;;  %v1336_v12 = vpack.c.bf16 (!%p267_p9), %v580_v11, %v579_v9  ;;  %v581_v13 = vld [vmem:[%s1910_s4 + $0x20] sm:$0xff] (!%p267_p9)  ;;  %v582_v14 = vld [vmem:[%s1910_s4 + $0x28] sm:$0xff] (!%p267_p9)  ;;  %v583_v16 = vld [vmem:[%s1910_s4 + $0x30] sm:$0xff] (!%p267_p9)  ;;  %s1500_s26 = smov (!%p267_p9), 32   ;;  %v1653_v36 = vshrl.u32 (!%p267_p9), %v502_v32, 7  ;;  %s1501_s10 = smov (!%p267_p9), 64  }
  0x10   : > { %v1340_v15 = vpack.c.bf16 (!%p267_p9), %v582_v14, %v581_v13  ;;  %v584_v17 = vld [vmem:[%s1910_s4 + $0x38] sm:$0xff] (!%p267_p9)  ;;  %v585_v19 = vld [vmem:[%s1910_s4 + $0x40] sm:$0xff] (!%p267_p9)  ;;  %v586_v20 = vld [vmem:[%s1910_s4 + $0x48] sm:$0xff] (!%p267_p9)  ;;  %vm567_vm7 = vcmask (!%p267_p9), 261120   ;;  %vm589_vm8 = vcmask (!%p267_p9), 785408   ;;  %s297_s20 = sand.u32 (!%p267_p9), 1, %s1490_s28  }
  0x11   : > { %1333 = vmatprep.subr.bf16.mxu1 (!%p267_p9), %v1332_v10  ;;  %v1344_v18 = vpack.c.bf16 (!%p267_p9), %v584_v17, %v583_v16  ;;  %v1169_v21 = vld [vmem:[%s1908_s2] ss:$0 sm:$0xff] (!%p267_p9)  ;;  %v1348_v22 = vpack.c.bf16 (!%p267_p9), %v586_v20, %v585_v19  ;;  %v587_v27 = vld [vmem:[%s1910_s4 + $0x50] sm:$0xff] (!%p267_p9)  ;;  %v588_v28 = vld [vmem:[%s1910_s4 + $0x58] sm:$0xff] (!%p267_p9)  ;;  %vm526_vm2 = vcmp.lt.s32.totalorder (!%p267_p9), %v1653_v36, 7  ;;  %v1661_v44 = vadd.s32 (!%p267_p9), 8, %v1653_v36 }
  0x12   : > { %1335 = vmatpush3.bf16.msra.mxu1 (!%p267_p9), %v1332_v10  ;;  %v1170_v24 = vld [vmem:[%s1909_s3] ss:$0 sm:$0xff] (!%p267_p9)  ;;  %v1352_v30 = vpack.c.bf16 (!%p267_p9), %v588_v28, %v587_v27  ;;  %vm513_vm4 = vcmp.lt.s32.totalorder (!%p267_p9), %v1653_v36, 1  ;;  %vm505_vm5 = vcmp.eq.s32.totalorder (!%p267_p9), %v1653_v36, 0  ;;  %v1178_v19 = vld [vmem:[%s1910_s4 + $0x68] sm:$0xff] (!%p267_p9)  ;;  %vm1078_vm9 = vcmask (!%p267_p9), 130048  }
  0x13   : > { %1337 = vmatprep.subr.bf16.mxu1 (!%p267_p9), %v1336_v12  ;;  %vm508_vm3 = vcmp.eq.s32.totalorder (!%p267_p9), %v1661_v44, 15  ;;  %v1176_v28 = vld [vmem:[%s1912_s6] ss:$0 sm:$0xff] (!%p267_p9)  ;;  %v914_v36 = vld [vmem:[%s1913_s7 + $0x8] sm:$0xff] (!%p267_p9)  ;;  %s1204_s22 = sshll.u32 (!%p267_p9), %s1571_s9, 8  ;;  %s1865_s12 = scalar_lea.sflag (!%p267_p9), [#allocation3], %s297_s20 }
  0x14   : > { %s1863_s25 = scalar_lea.hbm (!%p267_p9), %s1914_s8, %s1204_s22  ;;  %s1502_s9 = smov (!%p267_p9), [#allocation2]  }
  0x15   : > { %s1922_s17 = smov (!%p301_p10, %s1162_s17), 3 }
  0x16   : > { %s1163_s18 = sshll.u32 %s1922_s17, 2  ;;  %1339 = vmatpush3.bf16.msra.mxu1 %v1336_v12  ;;  %s1440_s17 = sshll.u32 %s1502_s9, 4  ;;  %s1441_s17 = int_to_ptr.vmem [resolvable:$false] %s1440_s17 }
  0x17   : > { %s304_s21 = scalar_lea.vmem %s1906_s0, %s1163_s18  ;;  %1341 = vmatprep.subr.bf16.mxu1 %v1340_v15  ;;  %s1442_s18 = scalar_lea.vmem %s1441_s17, 512 }
  0x18   : > { %v307_v0 = vld [vmem:[%s304_s21] sm:$0xf]  ;;  %v308_v2 = vld [vmem:[%s304_s21 + $0x4] sm:$0xf] }
  0x19   : > { %309 = vxpose.xlu0.b32.start.end [1/1] (short) (narrow) %v307_v0, 16 }
  0x1a   : > { %1343 = vmatpush3.bf16.msra.mxu1 %v1340_v15 }
  0x1b   : > { %1345 = vmatprep.subr.bf16.mxu1 %v1344_v18 }
  0x1e   : > { %341 = vxpose.xlu0.b32.start.end [1/1] (short) (narrow) %v308_v2, 16  ;;  %1347 = vmatpush3.bf16.msra.mxu1 %v1344_v18  ;;  %v1177_v18 = vld [vmem:[%s1910_s4 + $0x60] sm:$0xff] }
  0x1f   : > { %1349 = vmatprep.subr.bf16.mxu1 %v1348_v22  ;;  %v1356_v20 = vpack.c.bf16 %v1178_v19, %v1177_v18 }
  0x21   : > { %1357 = vmatprep.subr.bf16.mxu0 %v1356_v20 }
  0x22   : > { %1351 = vmatpush3.bf16.msra.mxu1 %v1348_v22  ;;  %v1180_v22 = vld [vmem:[%s1910_s4 + $0x78] sm:$0xff] }
  0x23   : > { %1353 = vmatprep.subr.bf16.mxu1 %v1352_v30 }
  0x26   : > { %1355 = vmatpush3.bf16.msra.mxu1 %v1352_v30 }
  0x99   : > { %v325_v3 = vpop.trf.xlu0 }
  0x9a   : > { %1252 = vmatprep.mubr.msk.f32.mxu0 %vm374_vm1, %v325_v3 }
  0x9d   : > { %v326_v4 = vpop.trf.xlu0 }
  0x9e   : > { %1253 = vmatmul.mubr.msk.f32.vlgmr.msra.gmra.mrb[0].mxu0 %vm374_vm1, %v326_v4 }
  0x9f   : > { %1359 = vmatpush3.bf16.msra.mxu0 %v1356_v20 }
  0xa1   : > { %v357_v5 = vpop.trf.xlu0 }
  0xa2   : > { %1255 = vmatprep.mubr.msk.f32.mxu0 %vm374_vm1, %v357_v5 }
  0xa5   : > { %v358_v6 = vpop.trf.xlu0 }
  0xa6   : > { %1256 = vmatmul.mubr.msk.f32.gmra.mrb[2].mxu0 %vm374_vm1, %v358_v6 }
 0x171   : > { %v1254_v23 = vpop.f32.mrb[0].mxu0 }
 0x172   : > { %v484_v25 = vmul.f32 %v1254_v23, %v1169_v21  ;;  %v457_v26 = vpop.f32.mrb[1].mxu0 }
 0x173   : > { %v483_v29 = vmul.f32 %v1169_v21, %v457_v26  ;;  %v1182_v26 = vld [vmem:[%s1910_s4 + $0x88] sm:$0xff] }
 0x174   : > { %v495_v31 = vadd.f32 %v1170_v24, %v484_v25  ;;  %v1181_v25 = vld [vmem:[%s1910_s4 + $0x80] sm:$0xff] }
 0x175   : > { %v494_v33 = vadd.f32 %v1170_v24, %v483_v29  ;;  %v1364_v29 = vpack.c.bf16 %v1182_v26, %v1181_v25 }
 0x176   : > { %v1647_v34 = vmax.f32 %v495_v31, 0.0 }
 0x177   : > { %v1649_v35 = vmax.f32 %v494_v33, 0.0 }
 0x178   : > { %541 = vrot.lane.b32.xlu1 %v1647_v34, %s1500_s26  ;;  %v523_v42 = vrot.slane %v1647_v34, 1  ;;  %v510_v62 = vrot.slane %v1647_v34, 7 }
 0x179   : > { %v1257_v37 = vpop.f32.mrb[2].mxu0  ;;  %v522_v41 = vrot.slane %v1649_v35, 1  ;;  %v509_v58 = vrot.slane %v1649_v35, 7 }
 0x17a   : > { %v467_v38 = vpop.f32.mrb[3].mxu0  ;;  %v486_v39 = vmul.f32 %v1257_v37, %v1169_v21  ;;  %v1183_v37 = vld [vmem:[%s1910_s4 + $0x90] sm:$0xff] }
 0x17b   : > { %v485_v40 = vmul.f32 %v1169_v21, %v467_v38  ;;  %v529_v47 = vsel %vm526_vm2, %v522_v41, %v523_v42  ;;  %v516_v2 = vsel %vm513_vm4, %v509_v58, %v510_v62  ;;  %v1179_v21 = vld [vmem:[%s1910_s4 + $0x70] sm:$0xff]  ;;  %v1184_v38 = vld [vmem:[%s1910_s4 + $0x98] sm:$0xff] }
 0x17c   : > { %539 = vrot.lane.b32.xlu1 %v1649_v35, %s1500_s26  ;;  %v497_v45 = vadd.f32 %v1170_v24, %v486_v39  ;;  %v1360_v23 = vpack.c.bf16 %v1180_v22, %v1179_v21 }
 0x17d   : > { %v496_v43 = vadd.f32 %v1170_v24, %v485_v40  ;;  %v1175_v24 = vld [vmem:[%s1911_s5] ss:$0 sm:$0xff]  ;;  %v1368_v40 = vpack.c.bf16 %v1184_v38, %v1183_v37  ;;  %v916_v37 = vld [vmem:[%s1913_s7 + $0x18] sm:$0xff] }
 0x17e   : > { %v1670_v49 = vmax.f32 %v497_v45, 0.0  ;;  %1361 = vmatprep.subr.bf16.mxu0 %v1360_v23  ;;  %v1185_v45 = vld [vmem:[%s1910_s4 + $0xa0] sm:$0xff] }
 0x17f   : > { %v1663_v46 = vmax.f32 %v496_v43, 0.0  ;;  %1363 = vmatpush3.bf16.msra.mxu0 %v1360_v23 }
 0x180   : > { %555 = vrot.lane.b32.xlu1 %v529_v47, %s1501_s10  ;;  %v525_v52 = vrot.slane %v1670_v49, 1  ;;  %v512_v57 = vrot.slane %v1670_v49, 7  ;;  %1365 = vmatprep.subr.bf16.mxu0 %v1364_v29  ;;  %v1186_v47 = vld [vmem:[%s1910_s4 + $0xa8] sm:$0xff] }
 0x181   : > { %v524_v48 = vrot.slane %v1663_v46, 1  ;;  %v511_v4 = vrot.slane %v1663_v46, 7 }
 0x182   : > { %v530_v54 = vsel %vm526_vm2, %v525_v52, %v522_v41  ;;  %v517_v60 = vsel %vm513_vm4, %v512_v57, %v509_v58 }
 0x183   : > { %v528_v50 = vsel %vm526_vm2, %v523_v42, %v524_v48  ;;  %v527_v53 = vsel %vm526_vm2, %v524_v48, %v525_v52  ;;  %v534_v55 = vsel %vm508_vm3, 0.0, %v530_v54  ;;  %v518_v61 = vsel %vm505_vm5, 0.0, %v517_v60  ;;  %1367 = vmatpush3.bf16.msra.mxu0 %v1364_v29  ;;  %v1188_v52 = vld [vmem:[%s1910_s4 + $0xb8] sm:$0xff] }
 0x184   : > { %543 = vrot.lane.b32.xlu1 %v1663_v46, %s1500_s26  ;;  %v532_v51 = vsel %vm508_vm3, 0.0, %v528_v50  ;;  %v515_v8 = vsel %vm513_vm4, %v510_v62, %v511_v4  ;;  %v514_v14 = vsel %vm513_vm4, %v511_v4, %v512_v57  ;;  %1369 = vmatprep.subr.bf16.mxu0 %v1368_v40  ;;  %v1372_v50 = vpack.c.bf16 %v1186_v47, %v1185_v45 }
 0x185   : > { %557 = vrot.lane.b32.xlu0 %v532_v51, %s1501_s10  ;;  %v520_v10 = vsel %vm505_vm5, 0.0, %v515_v8 }
 0x187   : > { %1371 = vmatpush3.bf16.msra.mxu0 %v1368_v40 }
 0x188   : > { %545 = vrot.lane.b32.xlu1 %v1670_v49, %s1500_s26  ;;  %1373 = vmatprep.subr.bf16.mxu0 %v1372_v50 }
 0x18b   : > { %1375 = vmatpush3.bf16.msra.mxu0 %v1372_v50 }
 0x18c   : > { %559 = vrot.lane.b32.xlu1 %v527_v53, %s1501_s10 }
 0x190   : > { %561 = vrot.lane.b32.xlu1 %v534_v55, %s1501_s10 }
 0x1ea   : > { %v542_v56 = vpop.permute.xlu1 %541 }
 0x1eb   : > { %v569_v5 = vsel %vm567_vm7, %v516_v2, %v542_v56 }
 0x1ee   : > { %v540_v59 = vpop.permute.xlu1 %539 }
 0x1ef   : > { %v568_v63 = vsel %vm567_vm7, %v518_v61, %v540_v59 }
 0x1f2   : > { %v556_v0 = vpop.permute.xlu1 %555 }
 0x1f3   : > { %v573_v1 = vsel %vm572_vm6, %v568_v63, %v556_v0 }
 0x1f4   : > { %1282 = vmatprep.mubr.msk.f32.mxu1 %vm589_vm8, %v573_v1 }
 0x1f6   : > { %v544_v3 = vpop.permute.xlu1 %543 }
 0x1f7   : > { %v558_v6 = vpop.permute.xlu0 %557  ;;  %v570_v11 = vsel %vm567_vm7, %v520_v10, %v544_v3 }
 0x1f8   : > { %v574_v7 = vsel %vm572_vm6, %v569_v5, %v558_v6 }
 0x1f9   : > { %1283 = vmatmul.mubr.msk.f32.vlgmr.msra.gmra.mrb[0].mxu1 %vm589_vm8, %v574_v7 }
 0x1fa   : > { %v546_v9 = vpop.permute.xlu1 %545 }
 0x1fb   : > { %v571_v15 = vsel %vm567_vm7, %v514_v14, %v546_v9 }
 0x1fe   : > { %v560_v12 = vpop.permute.xlu1 %559 }
 0x1ff   : > { %v575_v13 = vsel %vm572_vm6, %v570_v11, %v560_v12 }
 0x200   : > { %1285 = vmatprep.mubr.msk.f32.mxu1 %vm589_vm8, %v575_v13 }
 0x202   : > { %v562_v16 = vpop.permute.xlu1 %561 }
 0x203   : > { %v576_v17 = vsel %vm572_vm6, %v571_v15, %v562_v16 }
 0x204   : > { %1286 = vmatmul.mubr.msk.f32.gmra.mrb[2].mxu1 %vm589_vm8, %v576_v17 }
 0x2cc   : > { %v1284_v27 = vpop.f32.mrb[0].mxu1 }
 0x2cd   : > { %v693_v30 = vmul.f32 %v1284_v27, %v1175_v24  ;;  %v668_v31 = vpop.f32.mrb[1].mxu1 }
 0x2ce   : > { %v692_v32 = vmul.f32 %v1175_v24, %v668_v31  ;;  %v913_v31 = vld [vmem:[%s1913_s7] sm:$0xff] }
 0x2cf   : > { %v702_v33 = vadd.f32 %v1176_v28, %v693_v30 }
 0x2d0   : > { %v701_v39 = vadd.f32 %v1176_v28, %v692_v32  ;;  %v1380_v32 = vpack.c.bf16 %v914_v36, %v913_v31 }
 0x2d1   : > { %v706_v41 = vmax.f32 %v702_v33, 0.0  ;;  %v915_v33 = vld [vmem:[%s1913_s7 + $0x10] sm:$0xff] }
 0x2d2   : > { %v705_v42 = vmax.f32 %v701_v39, 0.0  ;;  %1388 = vmatprep.subr.bf16.mxu1 %v1380_v32  ;;  %v1384_v38 = vpack.c.bf16 %v916_v37, %v915_v33  ;;  %v1193_v39 = vld [vmem:[%s1911_s5 + $0x1] ss:$0 sm:$0xff] }
 0x2d3   : > { %v1751_v43 = vadd.f32 %v706_v41, %v1647_v34  ;;  %v1187_v34 = vld [vmem:[%s1910_s4 + $0xb0] sm:$0xff]  ;;  %1390 = vmatpush3.bf16.msra.mxu1 %v1380_v32  ;;  %v1194_v41 = vld [vmem:[%s1912_s6 + $0x1] ss:$0 sm:$0xff] }
 0x2d4   : > { %v1760_v48 = vadd.f32 %v705_v42, %v1649_v35  ;;  %v1376_v56 = vpack.c.bf16 %v1188_v52, %v1187_v34  ;;  %1389 = vmatprep.subr.bf16.mxu1 %v1384_v38 }
 0x2d5   : > { %743 = vrot.lane.b32.xlu1 %v1751_v43, %s1500_s26  ;;  %v726_v55 = vrot.slane %v1751_v43, 1  ;;  %v714_v15 = vrot.slane %v1751_v43, 7 }
 0x2d6   : > { %v725_v35 = vrot.slane %v1760_v48, 1  ;;  %1377 = vmatprep.subr.bf16.mxu0 %v1376_v56  ;;  %v713_v8 = vrot.slane %v1760_v48, 7 }
 0x2d7   : > { %v1287_v51 = vpop.f32.mrb[2].mxu1  ;;  %1379 = vmatpush3.bf16.msra.mxu0 %v1376_v56  ;;  %1391 = vmatpush3.bf16.msra.mxu1 %v1384_v38 }
 0x2d8   : > { %v695_v53 = vmul.f32 %v1287_v51, %v1175_v24  ;;  %v678_v54 = vpop.f32.mrb[3].mxu1  ;;  %v731_v61 = vsel %vm526_vm2, %v725_v35, %v726_v55  ;;  %v719_v18 = vsel %vm513_vm4, %v713_v8, %v714_v15  ;;  %1381 = vmatprep.subr.bf16.mxu0 %v1380_v32 }
 0x2d9   : > { %v694_v57 = vmul.f32 %v1175_v24, %v678_v54  ;;  %741 = vrot.lane.b32.xlu1 %v1760_v48, %s1500_s26 }
 0x2da   : > { %v704_v58 = vadd.f32 %v1176_v28, %v695_v53 }
 0x2db   : > { %v703_v59 = vadd.f32 %v1176_v28, %v694_v57 }
 0x2dc   : > { %v708_v60 = vmax.f32 %v704_v58, 0.0 }
 0x2dd   : > { %v707_v62 = vmax.f32 %v703_v59, 0.0  ;;  %757 = vrot.lane.b32.xlu1 %v731_v61, %s1501_s10 }
 0x2de   : > { %v1778_v63 = vadd.f32 %v708_v60, %v1670_v49 }
 0x2df   : > { %v1781_v0 = vadd.f32 %v707_v62, %v1663_v46 }
 0x2e0   : > { %v728_v1 = vrot.slane %v1778_v63, 1  ;;  %v716_v7 = vrot.slane %v1778_v63, 7 }
 0x2e1   : > { %747 = vrot.lane.b32.xlu1 %v1778_v63, %s1500_s26  ;;  %v727_v2 = vrot.slane %v1781_v0, 1  ;;  %v715_v16 = vrot.slane %v1781_v0, 7 }
 0x2e2   : > { %v732_v3 = vsel %vm526_vm2, %v728_v1, %v725_v35  ;;  %v720_v10 = vsel %vm513_vm4, %v716_v7, %v713_v8 }
 0x2e3   : > { %v736_v4 = vsel %vm508_vm3, 0.0, %v732_v3  ;;  %v730_v46 = vsel %vm526_vm2, %v726_v55, %v727_v2  ;;  %v729_v5 = vsel %vm526_vm2, %v727_v2, %v728_v1  ;;  %v721_v44 = vsel %vm505_vm5, 0.0, %v720_v10 }
 0x2e4   : > { %763 = vrot.lane.b32.xlu0 %v736_v4, %s1501_s10  ;;  %v734_v49 = vsel %vm508_vm3, 0.0, %v730_v46  ;;  %v718_v20 = vsel %vm513_vm4, %v714_v15, %v715_v16  ;;  %v717_v25 = vsel %vm513_vm4, %v715_v16, %v716_v7 }
 0x2e5   : > { %745 = vrot.lane.b32.xlu1 %v1781_v0, %s1500_s26  ;;  %v723_v24 = vsel %vm505_vm5, 0.0, %v718_v20  ;;  %s1161_s26 = sshll.u32 %s297_s20, 4 }
 0x2e9   : > { %759 = vrot.lane.b32.xlu1 %v734_v49, %s1501_s10 }
 0x2ed   : > { %761 = vrot.lane.b32.xlu1 %v729_v5, %s1501_s10  ;;  %s299_s10 = scalar_lea.vmem [#allocation2], %s1161_s26 }
 0x2ee   : > { %s1095_s21 = sshll.u32 %s299_s10, 4  ;;  %s1858_s21 = int_to_ptr.vmem [resolvable:$true] %s1095_s21 }
 0x2ef   : > { %s1436_s13 = scalar_lea.vmem %s1858_s21, 256  ;;  %p1443_p0 = scmp.lt.s32.totalorder %s1858_s21, %s1441_s17 }
 0x2f0   : > { %p1437_p11 = scmp.ne.s32.totalorder %s1858_s21, %s1436_s13  ;;  %p1444_p1 = scmp.lt.s32.totalorder %s1442_s18, %s1436_s13 }
 0x2f2   : > { %p1438_p12 = pnand %p1437_p11, %p1588_p5  ;;  %p1445_p2 = por %p1444_p1, %p1443_p0 }
 0x2f4   : > { %p1439_p13 = pneg %p1438_p12 }
 0x2f6   : > { %p1446_p3 = pnand %p1445_p2, %p1439_p13 }
 0x347   : > { %v744_v6 = vpop.permute.xlu1 %743 }
 0x348   : > { %v770_v19 = vsel %vm567_vm7, %v719_v18, %v744_v6 }
 0x34b   : > { %v742_v9 = vpop.permute.xlu1 %741 }
 0x34c   : > { %v769_v11 = vsel %vm567_vm7, %v721_v44, %v742_v9 }
 0x34f   : > { %v758_v12 = vpop.permute.xlu1 %757 }
 0x350   : > { %v773_v13 = vsel %vm572_vm6, %v769_v11, %v758_v12 }
 0x351   : > { %1312 = vmatprep.mubr.msk.f32.mxu0 %vm589_vm8, %v773_v13 }
 0x353   : > { %v748_v14 = vpop.permute.xlu1 %747 }
 0x354   : > { %v772_v28 = vsel %vm567_vm7, %v717_v25, %v748_v14 }
 0x356   : > { %v764_v23 = vpop.permute.xlu0 %763 }
 0x357   : > { %v746_v17 = vpop.permute.xlu1 %745  ;;  %v776_v30 = vsel %vm572_vm6, %v772_v28, %v764_v23 }
 0x358   : > { %v771_v26 = vsel %vm567_vm7, %v723_v24, %v746_v17 }
 0x35b   : > { %v760_v21 = vpop.permute.xlu1 %759 }
 0x35c   : > { %v774_v22 = vsel %vm572_vm6, %v770_v19, %v760_v21 }
 0x35d   : > { %1313 = vmatmul.mubr.msk.f32.vlgmr.msra.gmra.mrb[4].mxu0 %vm589_vm8, %v774_v22 }
 0x35e   : > { %1383 = vmatpush3.bf16.msra.mxu0 %v1380_v32 }
 0x35f   : > { %v762_v27 = vpop.permute.xlu1 %761  ;;  %1385 = vmatprep.subr.bf16.mxu0 %v1384_v38 }
 0x360   : > { %v775_v29 = vsel %vm572_vm6, %v771_v26, %v762_v27 }
 0x361   : > { %1315 = vmatprep.mubr.msk.f32.mxu0 %vm589_vm8, %v775_v29 }
 0x362   : > { %1316 = vmatmul.mubr.msk.f32.gmra.mrb[6].mxu0 %vm589_vm8, %v776_v30 }
 0x363   : > { %1387 = vmatpush3.bf16.msra.mxu0 %v1384_v38 }
 0x430   : > { %v1314_v40 = vpop.f32.mrb[4].mxu0 }
 0x431   : > { %v893_v42 = vmul.f32 %v1314_v40, %v1193_v39  ;;  %v868_v45 = vpop.f32.mrb[5].mxu0 }
 0x432   : > { %v892_v47 = vmul.f32 %v1193_v39, %v868_v45 }
 0x433   : > { %v902_v50 = vadd.f32 %v1194_v41, %v893_v42 }
 0x434   : > { %v901_v51 = vadd.f32 %v1194_v41, %v892_v47 }
 0x435   : > { %v906_v34 = vmax.f32 %v902_v50, 0.0  ;;  %v1317_v52 = vpop.f32.mrb[6].mxu0 }
 0x436   : > { %v905_v53 = vmax.f32 %v901_v51, 0.0  ;;  %v895_v54 = vmul.f32 %v1317_v52, %v1193_v39  ;;  %v878_v35 = vpop.f32.mrb[7].mxu0 }
 0x437   : > { %v894_v55 = vmul.f32 %v1193_v39, %v878_v35  ;;  %v910_v58 = vadd.f32 %v906_v34, %v1751_v43 }
 0x438   : > { %v909_v56 = vadd.f32 %v905_v53, %v1760_v48  ;;  %v904_v57 = vadd.f32 %v1194_v41, %v895_v54 }
 0x439   : > { %v903_v59 = vadd.f32 %v1194_v41, %v894_v55 }
 0x43a   : > { %v908_v60 = vmax.f32 %v904_v57, 0.0  ;;  %1326 = vmatprep.mubr.msk.f32.mxu0 %vm567_vm7, %v909_v56 }
 0x43b   : > { %v907_v61 = vmax.f32 %v903_v59, 0.0  ;;  %1327 = vmatmul.mubr.msk.f32.vlgmr.msra.gmra.mrb[8].mxu0 %vm567_vm7, %v910_v58 }
 0x43c   : > { %v912_v1 = vadd.f32 %v908_v60, %v1778_v63 }
 0x43d   : > { %v911_v62 = vadd.f32 %v907_v61, %v1781_v0 }
 0x43f   : > { %1329 = vmatprep.mubr.msk.f32.mxu1 %vm567_vm7, %v911_v62 }
 0x440   : > { %1330 = vmatmul.mubr.msk.f32.vlgmr.msra.gmra.mrb[4].mxu1 %vm567_vm7, %v912_v1 }
 0x50e   : > { %v1328_v48 = vpop.f32.mrb[8].mxu0 }
 0x50f   : > { %v995_v2 = vpop.f32.mrb[9].mxu0 }
 0x510   : > { %1014 = vxpose.xlu1.b32.start [1/2] (short) (narrow) %v995_v2, 8 }
 0x513   : > { %v1331_v43 = vpop.f32.mrb[4].mxu1 }
 0x514   : > { %1015 = vxpose.xlu1.b32.end [2/2] (short) (narrow) %v1328_v48, 8  ;;  %v1005_v3 = vpop.f32.mrb[5].mxu1 }
 0x515   : > { %1046 = vxpose.xlu0.b32.start [1/2] (short) (narrow) %v1005_v3, 8 }
 0x519   : > { %1047 = vxpose.xlu0.b32.end [2/2] (short) (narrow) %v1331_v43, 8 }
 0x590   : > { %v1030_v0 = vpop.trf.xlu1 }
 0x591   : > { %1079 = vst.msk [vmem:[%s299_s10] sm:$0xff] %vm1078_vm9, %v1030_v0 }
 0x595   : > { %v1062_v63 = vpop.trf.xlu0 }
 0x596   : > { %1080 = vst.msk [vmem:[%s299_s10 + $0x8] sm:$0xff] %vm1078_vm9, %v1062_v63 }
 0x597   : > { %1449 = shalt.err (!%p1446_p3)
}
 0x598   : > { %s1450_s19 = scalar_lea.hbm %s1863_s25, 256  ;;  %s1454_s10 = scalar_lea.hbm %s1914_s8, 512 }
 0x599   : > { %p1451_p4 = scmp.ne.s32.totalorder %s1863_s25, %s1450_s19  ;;  %p1455_p9 = scmp.lt.u32.totalorder %s1863_s25, %s1914_s8 }
 0x59a   : > { %p1456_p10 = scmp.lt.u32.totalorder %s1454_s10, %s1450_s19  ;;  %p1458_p12 = scmp.lt.u32.totalorder %s1450_s19, %s1863_s25 }
 0x59b   : > { %p1452_p7 = pnand %p1451_p4, %p1588_p5 }
 0x59c   : > { %p1457_p11 = por %p1456_p10, %p1455_p9 }
 0x59d   : > { %p1453_p8 = pneg %p1452_p7 }
 0x59e   : > { %p1459_p13 = por %p1458_p12, %p1457_p11 }
 0x5a0   : > { %p1460_p0 = pnand %p1459_p13, %p1453_p8 }
 0x5a2   : > { %1463 = shalt.err (!%p1460_p0)
}
 0x5a3   : > { %s1503_s24 = smov 128   ;;  %s1504_s13 = smov 8  }
 0x5a4   : > { %1392 = dma.vmem_to_hbm [thread:$0]  (%p1588_p5), %s1858_s21, 256, %s1863_s25, %s1865_s12, %s1503_s24, %s1503_s24, %s1504_s13  }
 0x5a5 PF: > { %p1398_p1 = scmp.ge.s32.totalorder %s1498_s30, 2  ;;  %s1110_s9 = sand.u32 1, %s1486_s27  }
 0x5a6   : > { %s1111_s17 = scalar_lea.sflag [#allocation3], %s1110_s9 }
 0x5a7   : > { %p1395_p2 = pnand %p1398_p1, %p1592_p6 }
 0x5a9   : > { %1481 = dma.done.wait (!%p1395_p2), %s1111_s17, 256  }
 0x5aa   : > { %1483 = vsyncadd (!%p1395_p2), %s1111_s17, 4294967040  ;;  %p18_p3 = scmp.ge.s32.totalorder %s1575_s11, 4   ;;  %s1917_s27 = smov %s1490_s28 }
 0x5ab   : > { %s1918_s28 = smov %s1494_s29  ;;  %s1919_s29 = smov %s1586_s14 }
 0x5ac   : > { %s1920_s30 = smov %s1575_s11  ;;  %20 = sbr.rel (!%p18_p3) target bundleno = 3 (0x3), region = 88 }
 0x5b3   :  { %1116 = vsyncpa [#allocation3], 1 }
 0x5b4   :  { %1118 = vsyncpa [#allocation3 + $0x1], 1 }

</bundles_post_ra>
